<compile_context>
chip_gen: v5e
topology: v5e:2x2
jax: 0.10.0
libtpu: 0.0.40
codegen_flags: <defaults>
</compile_context>

<pallas_src>
import functools

import jax
import jax.numpy as jnp
from jax.experimental import pallas as pl
from jax.experimental.pallas import tpu as pltpu

_MIB = 1 << 20


# ---------------------------------------------------------------------------
# Gate math: sigmoid(W2 @ relu(W1 @ pooled + b1) + b2), PyTorch nn.Linear
# convention (out_features, in_features).  Tiny tensors; exp goes to the EUP.
# ---------------------------------------------------------------------------
def _gate_col(pooled, w1, b1, w2, b2):
    # pooled: (C, 1) f32; w1: (Cs, C), b1: (Cs, 1), w2: (C, Cs), b2: (C, 1)
    h = jnp.maximum(jnp.dot(w1, pooled, preferred_element_type=jnp.float32) + b1, 0.0)
    z = jnp.dot(w2, h, preferred_element_type=jnp.float32) + b2
    return jax.nn.sigmoid(z)                                   # (C, 1)


def _gate_row(pooled, w1t, b1, w2t, b2):
    # pooled: (1, C) f32; w1t: (C, Cs), b1: (1, Cs), w2t: (Cs, C), b2: (1, C)
    h = jnp.maximum(jnp.dot(pooled, w1t, preferred_element_type=jnp.float32) + b1, 0.0)
    z = jnp.dot(h, w2t, preferred_element_type=jnp.float32) + b2
    return jax.nn.sigmoid(z)                                   # (1, C)


def _gate_batched(pooled_bc, w1, b1, w2, b2):
    # Between-pass gate for the two-pass path: one well-shaped (B,C)x(C,Cs)
    # matmul instead of B tiny column matmuls inside the pool kernel.
    h = jnp.maximum(pooled_bc @ w1.T + b1, 0.0)
    return jax.nn.sigmoid(h @ w2.T + b2)                       # (B, C) f32


# ---------------------------------------------------------------------------
# Fused path: one batch element per grid step (pool -> gate -> scale).
# ---------------------------------------------------------------------------
def _se_fused_nchw_kernel(x_ref, w1_ref, b1_ref, w2_ref, b2_ref, o_ref, *, inv_hw):
    # AdaptiveAvgPool2d(1): lane-axis reduce, accumulated in f32 without
    # materializing an f32 copy of the whole block.
    pooled = jnp.sum(x_ref[...], axis=-1, keepdims=True, dtype=jnp.float32) * inv_hw
    gate = _gate_col(pooled, w1_ref[...], b1_ref[...], w2_ref[...], b2_ref[...])
    # Scale in the input dtype (bf16 stays bf16: half the vld/vst traffic);
    # pooling/gate math above stays f32.
    o_ref[...] = (x_ref[...] * gate.astype(x_ref.dtype)).astype(o_ref.dtype)


def _se_fused_nhwc_kernel(x_ref, w1t_ref, b1_ref, w2t_ref, b2_ref, o_ref, *, inv_hw):
    # Channels-last: C on the lane axis (lane-dense stores), pooling is a
    # sublane-axis reduce, gate is a (1, C) row broadcast down the sublanes.
    pooled = jnp.sum(x_ref[...], axis=0, keepdims=True, dtype=jnp.float32) * inv_hw
    gate = _gate_row(pooled, w1t_ref[...], b1_ref[...], w2t_ref[...], b2_ref[...])
    o_ref[...] = (x_ref[...] * gate.astype(x_ref.dtype)).astype(o_ref.dtype)


def _se_fused_call_nchw(x3, w1, b1c, w2, b2c, vmem_limit):
    B, C, HW = x3.shape
    Cs = w1.shape[0]
    kernel = functools.partial(_se_fused_nchw_kernel, inv_hw=1.0 / HW)
    return pl.pallas_call(
        kernel,
        out_shape=jax.ShapeDtypeStruct((B, C, HW), x3.dtype),
        grid=(B,),
        in_specs=[
            pl.BlockSpec((None, C, HW), lambda b: (b, 0, 0)),   # per-batch block
            pl.BlockSpec((Cs, C), lambda b: (0, 0)),            # resident weights
            pl.BlockSpec((Cs, 1), lambda b: (0, 0)),
            pl.BlockSpec((C, Cs), lambda b: (0, 0)),
            pl.BlockSpec((C, 1), lambda b: (0, 0)),
        ],
        out_specs=pl.BlockSpec((None, C, HW), lambda b: (b, 0, 0)),
        compiler_params=pltpu.CompilerParams(
            dimension_semantics=("parallel",),
            vmem_limit_bytes=vmem_limit,
        ),
    )(x3, w1, b1c, w2, b2c)


def _se_fused_call_nhwc(x3, w1t, b1r, w2t, b2r, vmem_limit):
    B, HW, C = x3.shape
    Cs = w1t.shape[1]
    kernel = functools.partial(_se_fused_nhwc_kernel, inv_hw=1.0 / HW)
    return pl.pallas_call(
        kernel,
        out_shape=jax.ShapeDtypeStruct((B, HW, C), x3.dtype),
        grid=(B,),
        in_specs=[
            pl.BlockSpec((None, HW, C), lambda b: (b, 0, 0)),
            pl.BlockSpec((C, Cs), lambda b: (0, 0)),
            pl.BlockSpec((1, Cs), lambda b: (0, 0)),
            pl.BlockSpec((Cs, C), lambda b: (0, 0)),
            pl.BlockSpec((1, C), lambda b: (0, 0)),
        ],
        out_specs=pl.BlockSpec((None, HW, C), lambda b: (b, 0, 0)),
        compiler_params=pltpu.CompilerParams(
            dimension_semantics=("parallel",),
            vmem_limit_bytes=vmem_limit,
        ),
    )(x3, w1t, b1r, w2t, b2r)


# ---------------------------------------------------------------------------
# Two-pass path for shapes whose per-batch block does not fit VMEM.
# ---------------------------------------------------------------------------
def _pool_sum_kernel(x_ref, sums_ref, *, reduce_axis, total, tile):
    """Pass 1: accumulate per-channel sums.  Ragged mask only on the last tile."""
    t = pl.program_id(1)

    @pl.when(t == 0)
    def _init():
        sums_ref[...] = jnp.zeros_like(sums_ref)

    def _accumulate(mask_tail):
        x = x_ref[...]
        if mask_tail:
            # Out-of-range block data is undefined: zero positions past the
            # true extent before accumulating.
            pos = jax.lax.broadcasted_iota(jnp.int32, x.shape, reduce_axis)
            x = jnp.where(pos < (total - t * tile), x, jnp.zeros_like(x))
        sums_ref[...] += jnp.sum(x, axis=reduce_axis, keepdims=True,
                                 dtype=jnp.float32)

    if total % tile:
        last = pl.num_programs(1) - 1

        @pl.when(t != last)
        def _full_tile():
            _accumulate(False)

        @pl.when(t == last)
        def _tail_tile():
            _accumulate(True)
    else:
        _accumulate(False)


def _scale_kernel(x_ref, gate_ref, o_ref):
    """Pass 2: elementwise x * gate in the input dtype (1 vld + 1 vmul + 1 vst)."""
    o_ref[...] = (x_ref[...] * gate_ref[...].astype(x_ref.dtype)).astype(o_ref.dtype)


def _pick_tile(extent, other, itemsize, budget, granule):
    """Largest tile (multiple of `granule`) whose double-buffered in+out blocks
    fit the post-headroom budget; full extent is always a legal block."""
    per_unit = 4 * other * itemsize               # 2x in + 2x out buffers
    usable = max(budget - 3 * _MIB, granule * per_unit)
    cap = max(granule, (usable // per_unit) // granule * granule)
    return int(extent if extent <= cap else cap)


def _se_two_pass(x3, w1, b1, w2, b2, channels_last, budget, cap):
    B = x3.shape[0]
    if channels_last:
        HW, C = x3.shape[1], x3.shape[2]
        granule, reduce_axis = 8, 0               # tile the sublane (HW) axis
    else:
        C, HW = x3.shape[1], x3.shape[2]
        granule, reduce_axis = 128, 1             # tile the lane (HW) axis
    itemsize = x3.dtype.itemsize

    tile = _pick_tile(HW, C, itemsize, budget, granule)
    n_t = pl.cdiv(HW, tile)
    need = 4 * C * tile * itemsize + 4 * _MIB
    limit = int(min(cap, max(budget, need, 32 * _MIB)))

    if channels_last:
        x_spec = pl.BlockSpec((None, tile, C), lambda b, t: (b, t, 0))
        sums_shape = (B, 1, C)
        s_spec = pl.BlockSpec((None, 1, C), lambda b, t: (b, 0, 0))
    else:
        x_spec = pl.BlockSpec((None, C, tile), lambda b, t: (b, 0, t))
        sums_shape = (B, C, 1)
        s_spec = pl.BlockSpec((None, C, 1), lambda b, t: (b, 0, 0))

    pool = functools.partial(_pool_sum_kernel, reduce_axis=reduce_axis,
                             total=HW, tile=tile)
    sums = pl.pallas_call(
        pool,
        out_shape=jax.ShapeDtypeStruct(sums_shape, jnp.float32),
        grid=(B, n_t),
        in_specs=[x_spec],
        out_specs=s_spec,
        compiler_params=pltpu.CompilerParams(
            dimension_semantics=("parallel", "arbitrary"),
            vmem_limit_bytes=limit,
        ),
    )(x3)

    # FC -> ReLU -> FC -> sigmoid as a single batched XLA matmul (f32).
    pooled = sums.reshape(B, C) * (1.0 / HW)
    gate3 = _gate_batched(pooled, w1, b1, w2, b2).reshape(sums_shape)

    return pl.pallas_call(
        _scale_kernel,
        out_shape=jax.ShapeDtypeStruct(x3.shape, x3.dtype),
        grid=(B, n_t),
        in_specs=[x_spec, s_spec],
        out_specs=x_spec,
        compiler_params=pltpu.CompilerParams(
            dimension_semantics=("parallel", "parallel"),
            vmem_limit_bytes=limit,
        ),
    )(x3, gate3)


# ---------------------------------------------------------------------------
# Generation-aware VMEM budgeting.
# ---------------------------------------------------------------------------
def _tpu_vmem_capacity_bytes():
    try:
        return int(getattr(pltpu.get_tpu_info(), "vmem_capacity_bytes", 64 * _MIB))
    except Exception:
        return 64 * _MIB                          # conservative: assume v7x


def _default_vmem_budget(cap):
    if cap >= 100 * _MIB:                         # 128 MiB chips (v5e / v6e)
        return 104 * _MIB
    return int(cap * 3 // 4)                      # v7x: ~48 of 64 MiB / TC


# ---------------------------------------------------------------------------
# Public wrapper.
#   NCHW (default, matches the PyTorch module): x (B, C, H, W)
#   NHWC (channels_last=True, lane-dense for C % 128 == 0): x (B, H, W, C)
#   w1: (Cs, C), b1: (Cs,), w2: (C, Cs), b2: (C,)   (nn.Linear convention)
# ---------------------------------------------------------------------------
def se_module(x, w1, b1, w2, b2, *, channels_last=False, force_two_pass=False,
              vmem_budget_bytes=None):
    if channels_last:
        B, H, W, C = x.shape
        x3 = x.reshape(B, H * W, C)
    else:
        B, C, H, W = x.shape
        x3 = x.reshape(B, C, H * W)
    HW = H * W
    Cs = w1.shape[0]

    w1f = w1.astype(jnp.float32)
    b1f = b1.astype(jnp.float32)
    w2f = w2.astype(jnp.float32)
    b2f = b2.astype(jnp.float32)

    cap = _tpu_vmem_capacity_bytes()
    budget = int(vmem_budget_bytes) if vmem_budget_bytes is not None \
        else _default_vmem_budget(cap)

    block_bytes = C * HW * x.dtype.itemsize
    # Resident f32 weights/biases (double-buffered by the pipeline) are
    # subtracted from the budget before the fused dispatch decision (v7x).
    weight_bytes = 2 * 4 * (2 * C * Cs + C + Cs)
    fused_ok = (not force_two_pass) and \
        (4 * block_bytes + weight_bytes + 2 * _MIB <= budget)

    if fused_ok:
        limit = int(min(cap, max(budget, 32 * _MIB)))
        if channels_last:
            out3 = _se_fused_call_nhwc(x3, w1f.T, b1f.reshape(1, -1),
                                       w2f.T, b2f.reshape(1, -1), limit)
        else:
            out3 = _se_fused_call_nchw(x3, w1f, b1f.reshape(-1, 1),
                                       w2f, b2f.reshape(-1, 1), limit)
    else:
        out3 = _se_two_pass(x3, w1f, b1f, w2f, b2f, channels_last, budget, cap)
    return out3.reshape(x.shape)


def se_module_ref(x, w1, b1, w2, b2, *, channels_last=False):
    """Pure-JAX reference matching the PyTorch forward."""
    if channels_last:
        pooled = jnp.mean(x, axis=(1, 2))                      # (B, C)
    else:
        pooled = jnp.mean(x, axis=(2, 3))                      # (B, C)
    h = jnp.maximum(pooled @ w1.T + b1, 0.0)
    s = jax.nn.sigmoid(h @ w2.T + b2)                          # (B, C)
    if channels_last:
        return x * s[:, None, None, :]
    return x * s[:, :, None, None]


# ---------------------------------------------------------------------------
# Tests
# ---------------------------------------------------------------------------
if __name__ == "__main__":
    def run_case(name, B, C, H, W, squeeze_ratio, dtype, *, channels_last=False,
                 force_two_pass=False, vmem_budget_bytes=None, atol=1e-4):
        Cs = max(1, int(C * squeeze_ratio))
        key = jax.random.PRNGKey(0)
        kx, k1, k2, k3, k4 = jax.random.split(key, 5)
        xshape = (B, H, W, C) if channels_last else (B, C, H, W)
        x = jax.random.normal(kx, xshape, dtype=jnp.float32).astype(dtype)
        w1 = jax.random.normal(k1, (Cs, C), dtype=jnp.float32) * 0.5
        b1 = jax.random.normal(k2, (Cs,), dtype=jnp.float32) * 0.1
        w2 = jax.random.normal(k3, (C, Cs), dtype=jnp.float32) * 0.5
        b2 = jax.random.normal(k4, (C,), dtype=jnp.float32) * 0.1

        out = jax.block_until_ready(se_module(
            x, w1, b1, w2, b2, channels_last=channels_last,
            force_two_pass=force_two_pass, vmem_budget_bytes=vmem_budget_bytes))
        ref = se_module_ref(x.astype(jnp.float32), w1, b1, w2, b2,
                            channels_last=channels_last)

        assert out.shape == x.shape, f"{name}: bad shape {out.shape}"
        assert out.dtype == x.dtype, f"{name}: bad dtype {out.dtype}"
        err = float(jnp.max(jnp.abs(out.astype(jnp.float32) - ref)))
        assert err <= atol, f"{name}: max abs err {err} > {atol}"

    # Fused NCHW path (default dispatch) on the toy shape.
    run_case("fused_nchw_f32", 2, 4, 16, 16, 1.0, jnp.float32)
    # Fused NCHW with bf16 I/O (pool/gate in f32, scale in bf16).
    run_case("fused_nchw_bf16", 2, 16, 8, 8, 0.5, jnp.bfloat16, atol=6e-2)
    # Fused channels-last (lane-dense C=128) path.
    run_case("fused_nhwc_f32", 2, 128, 8, 8, 0.25, jnp.float32, channels_last=True)
    # Two-pass NCHW with a ragged last lane tile (HW=2500, tile=128).
    run_case("twopass_nchw_ragged_f32", 2, 8, 50, 50, 0.5, jnp.float32,
             force_two_pass=True, vmem_budget_bytes=1 << 20)
    # Two-pass channels-last with a ragged last sublane tile (HW=81, tile=8).
    run_case("twopass_nhwc_ragged_f32", 2, 128, 9, 9, 0.25, jnp.float32,
             channels_last=True, force_two_pass=True, vmem_budget_bytes=1 << 20)

    print("KERNEL_OK")
</pallas_src>

<mosaic_0001>
module attributes {stable_mosaic.version = 11 : i64} {
  func.func @_se_fused_nchw_kernel(%arg0: i32, %arg1: memref<1x4x256xf32, #tpu.memory_space<vmem>>, %arg2: memref<4x4xf32, #tpu.memory_space<vmem>>, %arg3: memref<4x1xf32, #tpu.memory_space<vmem>>, %arg4: memref<4x4xf32, #tpu.memory_space<vmem>>, %arg5: memref<4x1xf32, #tpu.memory_space<vmem>>, %arg6: memref<1x4x256xf32, #tpu.memory_space<vmem>>) attributes {dimension_semantics = [#tpu.dimension_semantics<parallel>], iteration_bounds = array<i64: 2>, scalar_prefetch = 0 : i64, scratch_operands = 0 : i64, tpu.core_type = #tpu.core_type<tc>, window_params = [{transform_indices = @transform_0, window_bounds = array<i64: 1, 4, 256>}, {pipeline_mode = #tpu.pipeline_mode<synchronous>, transform_indices = @transform_1, window_bounds = array<i64: 4, 4>}, {pipeline_mode = #tpu.pipeline_mode<synchronous>, transform_indices = @transform_2, window_bounds = array<i64: 4, 1>}, {pipeline_mode = #tpu.pipeline_mode<synchronous>, transform_indices = @transform_3, window_bounds = array<i64: 4, 4>}, {pipeline_mode = #tpu.pipeline_mode<synchronous>, transform_indices = @transform_4, window_bounds = array<i64: 4, 1>}, {transform_indices = @transform_5, window_bounds = array<i64: 1, 4, 256>}]} {
    %c0 = arith.constant 0 : index
    %c0_0 = arith.constant 0 : index
    %c0_1 = arith.constant 0 : index
    %0 = vector.load %arg1[%c0, %c0_0, %c0_1] : memref<1x4x256xf32, #tpu.memory_space<vmem>>, vector<1x4x256xf32>
    %1 = vector.shape_cast %0 : vector<1x4x256xf32> to vector<4x256xf32>
    %cst = arith.constant dense<0.000000e+00> : vector<4xf32>
    %2 = vector.multi_reduction <add>, %1, %cst [1] : vector<4x256xf32> to vector<4xf32>
    %3 = vector.shape_cast %2 : vector<4xf32> to vector<4x1xf32>
    %cst_2 = arith.constant 3.906250e-03 : f32
    %4 = vector.broadcast %cst_2 : f32 to vector<4x1xf32>
    %5 = arith.mulf %3, %4 : vector<4x1xf32>
    %c0_3 = arith.constant 0 : index
    %c0_4 = arith.constant 0 : index
    %6 = vector.load %arg2[%c0_3, %c0_4] : memref<4x4xf32, #tpu.memory_space<vmem>>, vector<4x4xf32>
    %c0_5 = arith.constant 0 : index
    %c0_6 = arith.constant 0 : index
    %7 = vector.load %arg3[%c0_5, %c0_6] : memref<4x1xf32, #tpu.memory_space<vmem>>, vector<4x1xf32>
    %c0_7 = arith.constant 0 : index
    %c0_8 = arith.constant 0 : index
    %8 = vector.load %arg4[%c0_7, %c0_8] : memref<4x4xf32, #tpu.memory_space<vmem>>, vector<4x4xf32>
    %c0_9 = arith.constant 0 : index
    %c0_10 = arith.constant 0 : index
    %9 = vector.load %arg5[%c0_9, %c0_10] : memref<4x1xf32, #tpu.memory_space<vmem>>, vector<4x1xf32>
    %cst_11 = arith.constant dense<0.000000e+00> : vector<4x1xf32>
    %10 = tpu.matmul %6, %5, %cst_11 {dimension_numbers = #tpu.dot_dimension_numbers<[1], [0], [0], [1], [0, 0, 1, 1], [], []>} : vector<4x4xf32>, vector<4x1xf32>, vector<4x1xf32> -> vector<4x1xf32>
    %11 = arith.addf %10, %7 : vector<4x1xf32>
    %cst_12 = arith.constant 0.000000e+00 : f32
    %12 = vector.broadcast %cst_12 : f32 to vector<4x1xf32>
    %13 = arith.maximumf %11, %12 : vector<4x1xf32>
    %cst_13 = arith.constant dense<0.000000e+00> : vector<4x1xf32>
    %14 = tpu.matmul %8, %13, %cst_13 {dimension_numbers = #tpu.dot_dimension_numbers<[1], [0], [0], [1], [0, 0, 1, 1], [], []>} : vector<4x4xf32>, vector<4x1xf32>, vector<4x1xf32> -> vector<4x1xf32>
    %15 = arith.addf %14, %9 : vector<4x1xf32>
    %16 = arith.negf %15 : vector<4x1xf32>
    %17 = math.exp %16 : vector<4x1xf32>
    %cst_14 = arith.constant 1.000000e+00 : f32
    %18 = vector.broadcast %cst_14 : f32 to vector<4x1xf32>
    %19 = arith.addf %18, %17 : vector<4x1xf32>
    %20 = arith.divf %18, %19 : vector<4x1xf32>
    %c0_15 = arith.constant 0 : index
    %c0_16 = arith.constant 0 : index
    %c0_17 = arith.constant 0 : index
    %21 = vector.load %arg1[%c0_15, %c0_16, %c0_17] : memref<1x4x256xf32, #tpu.memory_space<vmem>>, vector<1x4x256xf32>
    %22 = vector.shape_cast %21 : vector<1x4x256xf32> to vector<4x256xf32>
    %23 = vector.broadcast %20 : vector<4x1xf32> to vector<4x256xf32>
    %24 = arith.mulf %22, %23 : vector<4x256xf32>
    %c0_18 = arith.constant 0 : index
    %c0_19 = arith.constant 0 : index
    %c0_20 = arith.constant 0 : index
    %25 = vector.load %arg6[%c0_18, %c0_19, %c0_20] : memref<1x4x256xf32, #tpu.memory_space<vmem>>, vector<1x4x256xf32>
    %26 = vector.shape_cast %25 : vector<1x4x256xf32> to vector<4x256xf32>
    %27 = vector.shape_cast %24 : vector<4x256xf32> to vector<1x4x256xf32>
    tpu.vector_store %arg6[%c0_18, %c0_19, %c0_20], %27 {strides = array<i32>} : memref<1x4x256xf32, #tpu.memory_space<vmem>>, vector<1x4x256xf32>,
    return
  }
  func.func @transform_0(%arg0: i32) -> (i32, i32, i32) {
    %c0_i32 = arith.constant 0 : i32
    %c0_i32_0 = arith.constant 0 : i32
    %c0_i32_1 = arith.constant 0 : i32
    return %arg0, %c0_i32, %c0_i32_0 : i32, i32, i32
  }
  func.func @transform_1(%arg0: i32) -> (i32, i32) {
    %c0_i32 = arith.constant 0 : i32
    %c0_i32_0 = arith.constant 0 : i32
    %c0_i32_1 = arith.constant 0 : i32
    return %c0_i32, %c0_i32_0 : i32, i32
  }
  func.func @transform_2(%arg0: i32) -> (i32, i32) {
    %c0_i32 = arith.constant 0 : i32
    %c0_i32_0 = arith.constant 0 : i32
    %c0_i32_1 = arith.constant 0 : i32
    return %c0_i32, %c0_i32_0 : i32, i32
  }
  func.func @transform_3(%arg0: i32) -> (i32, i32) {
    %c0_i32 = arith.constant 0 : i32
    %c0_i32_0 = arith.constant 0 : i32
    %c0_i32_1 = arith.constant 0 : i32
    return %c0_i32, %c0_i32_0 : i32, i32
  }
  func.func @transform_4(%arg0: i32) -> (i32, i32) {
    %c0_i32 = arith.constant 0 : i32
    %c0_i32_0 = arith.constant 0 : i32
    %c0_i32_1 = arith.constant 0 : i32
    return %c0_i32, %c0_i32_0 : i32, i32
  }
  func.func @transform_5(%arg0: i32) -> (i32, i32, i32) {
    %c0_i32 = arith.constant 0 : i32
    %c0_i32_0 = arith.constant 0 : i32
    %c0_i32_1 = arith.constant 0 : i32
    return %arg0, %c0_i32, %c0_i32_0 : i32, i32, i32
  }
}

</mosaic_0001>

<bundles_post_ra>
// kernel: tpu_custom_call.1
= control target key start
LH: loop header
LB: loop body
LE: loop exit
PB: predicated region body
PF: predicated region fallthrough
CT: control target
= control target key end

     0   :  { %10 = vsyncpa [#allocation3], 0  ;;  %s783_s0 = inlined_call_operand.hbm [shape: f32[2,4,256], index: 0, kind: input, shape index: {}]   ;;  %s784_s1 = inlined_call_operand.vmem [shape: f32[4,4], index: 1, kind: input, shape index: {}]   ;;  %s785_s2 = inlined_call_operand.vmem [shape: f32[4,1], index: 2, kind: input, shape index: {}]   ;;  %s786_s3 = inlined_call_operand.vmem [shape: f32[4,4], index: 3, kind: input, shape index: {}]   ;;  %s787_s4 = inlined_call_operand.vmem [shape: f32[4,1], index: 4, kind: input, shape index: {}]   ;;  %s788_s5 = inlined_call_operand.hbm [shape: f32[2,4,256], index: 5, kind: output, shape index: {}]  }
   0x1   :  { %12 = vsyncpa [#allocation3 + $0x1], 0 }
   0x2   :  { %13 = vsyncpa [#allocation4], 0 }
   0x3   :  { %15 = vsyncpa [#allocation4 + $0x1], 0  ;;  %s636_s18 = smov 0   ;;  %s638_s19 = smov 0  }
   0x4   :  { %s640_s20 = smov 0   ;;  %s642_s21 = smov 0  }
   0x5 LB: > { %s657_s22 = sadd.s32 4294967295, %s602_s21   ;;  %s432_s23 = sadd.s32 4294967294, %s602_s21   ;;  %s602_s21 = sphi %s642_s21, %s798_s21   ;;  %s598_s20 = sphi %s640_s20, %s797_s20   ;;  %s594_s19 = sphi %s638_s19, %s796_s19   ;;  %s590_s18 = sphi %s636_s18, %s795_s18  }
   0x6   : > { %s661_s24 = sadd.s32 1, %s602_s21   ;;  %s28_s25 = sadd.s32 1, %s598_s20 }
   0x7   : > { %s25_s26 = ssub.s32 %s602_s21, %s661_s24  ;;  %p35_p0 = scmp.ne.s32.totalorder %s598_s20, %s594_s19 }
   0x8   : > { %p26_p1 = scmp.eq.s32.totalorder %s25_s26, 0  ;;  %p36_p2 = scmp.eq.s32.totalorder %s602_s21, 0 }
   0x9   : > { %p41_p3 = scmp.ne.s32.totalorder %s594_s19, %s590_s18  ;;  %p42_p4 = scmp.eq.s32.totalorder %s657_s22, 0 }
   0xa   : > { %s673_s27 = scalar_select %p26_p1, %s598_s20, %s28_s25  }
   0xb   : > { %p675_p5 = por %p36_p2, %p35_p0  ;;  %p679_p6 = por %p42_p4, %p41_p3 }
   0xc   : > { %p149_p7 = scmp.eq.s32.totalorder %s657_s22, 1  ;;  %p155_p8 = scmp.eq.s32.totalorder %s432_s23, 1 }
   0xd   : > { %p465_p10 = scmp.lt.s32.totalorder %s602_s21, 2  ;;  %s187_s7 = sand.u32 1, %s598_s20  }
   0xe   : > { %p686_p11 = por %p149_p7, %p35_p0  ;;  %p690_p12 = por %p155_p8, %p41_p3 }
   0xf   : > { %s451_s8 = sshll.u32 %s602_s21, 3  ;;  %s435_s9 = sshll.u32 %s187_s7, 3 }
  0x10   : > { %s196_s12 = scalar_lea.hbm %s783_s0, %s451_s8  ;;  %s191_s14 = scalar_lea.vmem [#allocation2], %s435_s9 }
  0x11   : > { %s198_s13 = sshll.u32 %s196_s12, 4  ;;  %s200_s15 = sshll.u32 %s191_s14, 4  ;;  %s199_s13 = int_to_ptr.hbm [resolvable:$true] %s198_s13  ;;  %s201_s15 = int_to_ptr.vmem [resolvable:$true] %s200_s15 }
  0x12   : > { %p701_p13 = pnand %p465_p10, %p675_p5  ;;  %p438_p0 = scmp.ge.s32.totalorder %s602_s21, 1 }
  0x13   : > { %p205_p1 = scmp.lt.s32.totalorder %s602_s21, 3  ;;  %s188_s17 = scalar_lea.sflag [#allocation3], %s187_s7 }
  0x14   : > { %s506_s23 = sshra.s32 %s199_s13, 4  ;;  %p510_p3 = pneg %p701_p13  ;;  %s507_s23 = int_to_ptr.hbm [resolvable:$true] %s506_s23 }
  0x15   : > { %s508_s25 = scalar_lea.hbm %s507_s23, 8  ;;  %s513_s28 = scalar_lea.hbm %s783_s0, 16 }
  0x16   : > { %p509_p2 = scmp.ne.s32.totalorder %s507_s23, %s508_s25  ;;  %p514_p5 = scmp.lt.s32.totalorder %s507_s23, %s783_s0 }
  0x17   : > { %p515_p8 = scmp.lt.s32.totalorder %s513_s28, %s508_s25 }
  0x18   : > { %p511_p4 = pnand %p510_p3, %p509_p2 }
  0x19   : > { %p516_p10 = por %p515_p8, %p514_p5 }
  0x1a   : > { %p512_p7 = pneg %p511_p4 }
  0x1c   : > { %p517_p9 = pnand %p516_p10, %p512_p7 }
  0x1e   : > { %520 = shalt.err (!%p517_p9)
}
  0x1f   : > { %460 = dma.hbm_to_vmem [thread:$0]  (!%p701_p13), %s199_s13, 128, %s201_s15, %s188_s17  }
  0x20   : > { %p206_p2 = pnand %p438_p0, %p205_p1 }
  0x21   : > { %s722_s7 = sand.u32 (!%p206_p2), 1, %s594_s19  }
  0x22   : > { %209 = sbr.rel (%p206_p2) target bundleno = 580 (0x244), region = 40  ;;  %s439_s11 = sshll.u32 (!%p206_p2), %s722_s7, 3 }
  0x23   : > { %s212_s12 = scalar_lea.sflag (!%p206_p2), [#allocation3], %s722_s7  ;;  %s215_s14 = scalar_lea.vmem (!%p206_p2), [#allocation2], %s439_s11 }
  0x27   : > { %581 = dma.done.wait (%p679_p6), %s212_s12, 128  }
  0x28   : > { %583 = vsyncadd (%p679_p6), %s212_s12, 4294967168  ;;  %v243_v0 = vld [vmem:[%s215_s14] sm:$0xff]  ;;  %vm250_vm0 = vcmask 1043456   ;;  %v257_v8 = vld [vmem:[%s784_s1] sm:$0xf]  ;;  %vm261_vm1 = vcmask 31744  }
  0x29   : > { %245 = vst [vmem:[#allocation1] ss:$2 sm:$0xff] %v243_v0  ;;  %v258_v9 = vld [vmem:[%s785_s2] sm:$0xf]  ;;  %v604_v14 = vmov 0   ;;  %s452_s8 = sshll.u32 %s657_s22, 3 }
  0x2a   : > { %v259_v13 = vld [vmem:[%s786_s3] sm:$0xf]  ;;  %501 = vset.pattern.permute.xlu0 %v604_v14  ;;  %v605_v31 = vmov 839922192   ;;  %s357_s10 = scalar_lea.hbm %s788_s5, %s452_s8  ;;  %s242_s12 = scalar_lea.vmem [#allocation5], %s439_s11 }
  0x2b   : > { %v260_v15 = vld [vmem:[%s787_s4] sm:$0xf]  ;;  %v339_v32 = vunpack.c.l.s4 %v605_v31  ;;  %s359_s14 = sshll.u32 %s242_s12, 4  ;;  %s361_s13 = sshll.u32 %s357_s10, 4  ;;  %s360_s14 = int_to_ptr.vmem [resolvable:$true] %s359_s14  ;;  %s362_s13 = int_to_ptr.hbm [resolvable:$true] %s361_s13 }
  0x2c   : > { %s346_s15 = scalar_lea.sflag [#allocation4], %s722_s7  ;;  %s550_s29 = sshra.s32 %s362_s13, 4  ;;  %s551_s29 = int_to_ptr.hbm [resolvable:$true] %s550_s29 }
  0x2d   : > { %v340_v33 = vunpack.c.0.s8 %v339_v32  ;;  %s552_s22 = scalar_lea.hbm %s551_s29, 8  ;;  %s556_s23 = scalar_lea.hbm %s788_s5, 16 }
  0x2e   : > { %p553_p6 = scmp.ne.s32.totalorder %s551_s29, %s552_s22  ;;  %p557_p0 = scmp.lt.s32.totalorder %s551_s29, %s788_s5 }
  0x2f   : > { %p558_p1 = scmp.lt.s32.totalorder %s556_s23, %s552_s22 }
  0x30   : > { %v246_v1 = vld.sshfl [vmem:[#allocation1] sm:$0xff pattern:$0x75316420]  ;;  %v247_v2 = vld.sshfl [vmem:[#allocation1 + $0x8] sm:$0xff pattern:$0x75316420]  ;;  %p554_p9 = pnand %p553_p6, %p686_p11 }
  0x31   : > { %v251_v3 = vsel %vm250_vm0, %v246_v1, 0.0  ;;  %v252_v4 = vsel %vm250_vm0, %v247_v2, 0.0  ;;  %p559_p3 = por %p558_p1, %p557_p0 }
  0x32   : > { %v253_v5 = vadd.f32 %v252_v4, %v251_v3  ;;  %p555_p13 = pneg %p554_p9 }
  0x34   : > { %254 = vadd.xlane.f32.xlu0 %v253_v5  ;;  %p560_p4 = pnand %p559_p3, %p555_p13 }
  0xa7   : > { %v255_v6 = vpop.xlane.xlu0 %254 }
  0xa8   : > { %v256_v7 = vmul.f32 0.00390625, %v255_v6 }
  0xaa   : > { %441 = vmatpush.msk.msra.mxu0 %vm250_vm0, %v256_v7 }
  0xab   : > { %442 = vmatmul.msk.f32.vlgmr.msra.gmra.mxu0 %vm261_vm1, %v257_v8 }
 0x128   : > { %v285_v10 = vpop.f32.mrf.mxu0 }
 0x129   : > { %v286_v11 = vadd.f32 %v285_v10, %v258_v9 }
 0x12b   : > { %v288_v12 = vmax.f32 %v286_v11, 0.0 }
 0x12d   : > { %443 = vmatpush.msk.msra.mxu1 %vm250_vm0, %v288_v12 }
 0x12e   : > { %444 = vmatmul.msk.f32.vlgmr.msra.gmra.mxu1 %vm261_vm1, %v259_v13 }
 0x1ab   : > { %v312_v16 = vpop.f32.mrf.mxu1 }
 0x1ac   : > { %v313_v17 = vadd.f32 %v312_v16, %v260_v15 }
 0x1ae   : > { %v445_v18 = vmul.f32 -1.442695, %v313_v17 }
 0x1b0   : > { %502 = vpow2.f32 %v445_v18 }
 0x1b6   : > { %v503_v19 = vpop.eup %502 }
 0x1b7   : > { %v318_v20 = vadd.f32 1.0, %v503_v19 }
 0x1b9   : > { %504 = vrcp.f32 %v318_v20  ;;  %v330_v24 = vand.u32 2147483648, %v318_v20  ;;  %v328_v26 = vand.u32 2147483647, %v318_v20  ;;  %vm324_vm3 = vweird.f32 %v318_v20 }
 0x1bb   : > { %v331_v28 = vor.u32 1.1754944e-38, %v330_v24  ;;  %vm329_vm5 = vcmp.eq.f32.partialorder %v328_v26, 8.507059e+37 }
 0x1bf   : > { %v505_v21 = vpop.eup %504 }
 0x1c0   : > { %v320_v22 = vmul.f32 %v505_v21, %v318_v20  ;;  %vm325_vm2 = vweird.f32 %v505_v21 }
 0x1c1   : > { %vm326_vm4 = vmor %vm324_vm3, %vm325_vm2 }
 0x1c2   : > { %v321_v23 = vsub.f32 1.0, %v320_v22 }
 0x1c4   : > { %v322_v25 = vmul.f32 %v505_v21, %v321_v23 }
 0x1c6   : > { %v323_v27 = vadd.f32 %v505_v21, %v322_v25 }
 0x1c8   : > { %v327_v29 = vsel %vm326_vm4, %v505_v21, %v323_v27 }
 0x1c9   : > { %v332_v30 = vsel %vm329_vm5, %v331_v28, %v327_v29 }
 0x1ca   : > { %336 = vperm.xlu0 %501, %v332_v30  }
 0x23c   : > { %v337_v34 = vpop.permute.xlu0 %336 }
 0x23d   : > { %v341_v35 = vperm.slane %v337_v34, %v340_v33 }
 0x23f   : > { %v343_v36 = vmul.f32 %v341_v35, %v243_v0 }
 0x241   : > { %344 = vst [vmem:[%s242_s12] sm:$0xff] %v343_v36 }
 0x242   : > { %563 = shalt.err (!%p560_p4)
}
 0x243   : > { %455 = dma.vmem_to_hbm [thread:$0]  (%p686_p11), %s360_s14, 128, %s362_s13, %s346_s15  }
 0x244 PF: > { %s373_s7 = sand.u32 1, %s590_s18   ;;  %p794_p7 = scmp.ge.s32.totalorder %s602_s21, 2 }
 0x245   : > { %s374_s26 = scalar_lea.sflag [#allocation4], %s373_s7 }
 0x246   : > { %p462_p5 = pnand %p794_p7, %p690_p12 }
 0x248   : > { %p463_p8 = pneg %p462_p5 }
 0x24a   : > { %585 = dma.done.wait (%p463_p8), %s374_s26, 128  }
 0x24b   : > { %587 = vsyncadd (%p463_p8), %s374_s26, 4294967168  ;;  %p18_p10 = scmp.ge.s32.totalorder %s661_s24, 4   ;;  %s795_s18 = smov %s594_s19 }
 0x24c   : > { %s796_s19 = smov %s598_s20  ;;  %s797_s20 = smov %s673_s27 }
 0x24d   : > { %s798_s21 = smov %s661_s24  ;;  %20 = sbr.rel (!%p18_p10) target bundleno = 5 (0x5), region = 85 }
 0x252   :  { %380 = vsyncpa [#allocation3], 1 }
 0x253   :  { %382 = vsyncpa [#allocation3 + $0x1], 1 }
 0x254   :  { %383 = vsyncpa [#allocation4], 1 }
 0x255   :  { %385 = vsyncpa [#allocation4 + $0x1], 1 }

</bundles_post_ra>
